<compile_context>
chip_gen: v7x
topology: tpu7x:2x2x1
jax: 0.10.0
libtpu: 0.0.40
codegen_flags: <defaults>
</compile_context>

<pallas_src>
import functools
import inspect

import jax
import jax.numpy as jnp
from jax.experimental import pallas as pl
from jax.experimental.pallas import tpu as pltpu

TEMP = 2.0
LANE = 128


def _round_up(x, m):
    return (x + m - 1) // m * m


def _vmem_capacity_bytes():
    try:
        cap = getattr(pltpu.get_tpu_info(), "vmem_capacity_bytes", None)
        if cap:
            return int(cap)
    except Exception:
        pass
    return 64 * 1024 * 1024  # conservative (v7x-sized) fallback


def _supports_pipeline_mode():
    if not hasattr(pl, "Buffered"):
        return False
    try:
        return "pipeline_mode" in inspect.signature(pl.BlockSpec).parameters
    except (TypeError, ValueError):
        return False


_HAS_PIPELINE_MODE = _supports_pipeline_mode()


def _gap_clip_dense_kernel(x_ref, w_ref, b_ref, o_ref, acc_ref, *,
                           temp, inv_hw_temp, thw, hw_rem, num_hw):
    # x_ref: (TB, C, THW)  w_ref: (C, NC_pad)  b_ref: (1, NC_pad)
    # o_ref: (TB, NC_pad)  acc_ref: (TB, C, 128) f32 running spatial sum
    hw_idx = pl.program_id(1)

    @pl.when(hw_idx == 0)
    def _init():
        acc_ref[...] = jnp.zeros_like(acc_ref)

    def _accumulate(valid):
        # Sum the first `valid` (static) positions of this tile into the
        # accumulator using only aligned 128-lane VALU adds (no per-step
        # cross-lane reduce / relayout).
        parts = None
        for j in range(thw // LANE):
            lo = j * LANE
            if lo >= valid:            # fully out-of-range chunk: contributes 0
                break
            chunk = x_ref[:, :, lo:lo + LANE].astype(jnp.float32)
            if lo + LANE > valid:      # the single partially-valid chunk
                pos = jax.lax.broadcasted_iota(jnp.int32, chunk.shape, 2)
                chunk = jnp.where(pos < (valid - lo), chunk, 0.0)
            parts = chunk if parts is None else parts + chunk
        acc_ref[...] += parts

    if hw_rem == 0:                    # THW divides HW: every tile is full
        _accumulate(thw)
    else:
        @pl.when(hw_idx < num_hw - 1)
        def _full_tile():
            _accumulate(thw)

        @pl.when(hw_idx == num_hw - 1)
        def _ragged_tile():
            _accumulate(hw_rem)

    @pl.when(hw_idx == num_hw - 1)
    def _finalize():
        # gap / temp == sum * (1 / (HW * temp)); masked lanes contributed 0.
        gap_sum = jnp.sum(acc_ref[...], axis=-1)                    # (TB, C)
        y = temp * (jax.nn.sigmoid(gap_sum * inv_hw_temp) - 0.5)    # (TB, C) f32
        w = w_ref[...]
        if w_ref.dtype == jnp.float32:
            out = jnp.dot(y, w, preferred_element_type=jnp.float32)
        else:  # bf16 (or other narrow) weight: native MXU path, f32 accumulate
            out = jnp.dot(y.astype(w_ref.dtype), w,
                          preferred_element_type=jnp.float32)
        o_ref[...] = (out + b_ref[...]).astype(o_ref.dtype)


def gap_clip_block(x_nchw, weight, bias, *, temp=TEMP, hw_tile=None, batch_tile=None):
    """x_nchw: (B, C, H, W); weight: (C, num_classes); bias: (num_classes,)."""
    B, C, H, W = x_nchw.shape
    HW = H * W
    num_classes = weight.shape[1]
    x_itemsize = jnp.dtype(x_nchw.dtype).itemsize
    w_itemsize = jnp.dtype(weight.dtype).itemsize
    NC_pad = _round_up(num_classes, LANE)       # lane-dense output / weight cols

    # ---- per-generation VMEM budget: ~96 MiB on v5e/v6e, ~48 MiB on v7x ----
    vmem_cap = _vmem_capacity_bytes()
    total_budget = min(vmem_cap * 3 // 4, 96 * 1024 * 1024)
    n_w_buf = 1 if _HAS_PIPELINE_MODE else 2
    wb_bytes = n_w_buf * (C * NC_pad * w_itemsize + NC_pad * 4)   # weight + bias

    # ---- batch tile: multiple of 8 (or full B), >= 2 tiles when B > 8 so the
    #      "parallel" axis feeds both v7x TensorCores ----
    if batch_tile is not None:
        TB = int(batch_tile)
        TB_min = TB
    elif B <= 8:
        TB = B
        TB_min = B
    else:
        TB = min(128, _round_up((B + 1) // 2, 8))
        TB_min = 8

    # ---- HW tile: largest multiple of 128 keeping (2 x-buffers + resident
    #      weight + acc + out) inside the budget; shrink TB if even THW=128
    #      would not fit (large-C case) ----
    def _x_tile_budget(tb):
        resident = wb_bytes + tb * C * LANE * 4 + 2 * tb * NC_pad * 4
        return max(0, (total_budget - resident) // 2)   # per streamed x buffer

    while True:
        thw_fit = (_x_tile_budget(TB) // (TB * C * x_itemsize)) // LANE * LANE
        if thw_fit >= LANE or TB <= TB_min:
            break
        TB = max(TB_min, _round_up(TB // 2, 8))

    if hw_tile is not None:
        THW = _round_up(int(hw_tile), LANE)
    else:
        THW = int(min(max(thw_fit, LANE), _round_up(HW, LANE)))

    B_pad = _round_up(B, TB)
    num_hw = pl.cdiv(HW, THW)
    hw_rem = HW % THW

    # ---- host side: free reshape of x (no pad / no copy of the big tensor),
    #      tiny weight/bias pad to lane-dense columns (kept in input dtype) ----
    x_flat = x_nchw.reshape(B, C, HW)
    w_pad = jnp.pad(weight, ((0, 0), (0, NC_pad - num_classes)))
    b_pad = jnp.pad(bias.astype(jnp.float32), (0, NC_pad - num_classes)).reshape(1, NC_pad)

    kernel = functools.partial(
        _gap_clip_dense_kernel,
        temp=float(temp),
        inv_hw_temp=float(1.0 / (HW * temp)),
        thw=THW, hw_rem=hw_rem, num_hw=num_hw,
    )
    grid = (B_pad // TB, num_hw)
    vmem_limit = int(min(vmem_cap * 9 // 10, total_budget + (16 << 20)))

    def _launch(single_buffer_consts):
        def const_spec(shape):
            idx = lambda bi, hi: (0, 0)
            if single_buffer_consts:
                return pl.BlockSpec(shape, idx, pipeline_mode=pl.Buffered(1))
            return pl.BlockSpec(shape, idx)

        return pl.pallas_call(
            kernel,
            out_shape=jax.ShapeDtypeStruct((B_pad, NC_pad), jnp.float32),
            grid_spec=pltpu.PrefetchScalarGridSpec(
                num_scalar_prefetch=0,
                grid=grid,
                in_specs=[
                    # streamed activation tile (unpadded; ragged edges masked in-kernel)
                    pl.BlockSpec((TB, C, THW), lambda bi, hi: (bi, 0, hi)),
                    # weight / bias stay VMEM-resident (constant block index)
                    const_spec((C, NC_pad)),
                    const_spec((1, NC_pad)),
                ],
                out_specs=pl.BlockSpec((TB, NC_pad), lambda bi, hi: (bi, 0)),
                scratch_shapes=[pltpu.VMEM((TB, C, LANE), jnp.float32)],
            ),
            compiler_params=pltpu.CompilerParams(
                dimension_semantics=("parallel", "arbitrary"),
                vmem_limit_bytes=vmem_limit,
            ),
        )(x_flat, w_pad, b_pad)

    if _HAS_PIPELINE_MODE:
        try:
            out = _launch(True)
        except Exception:           # older/newer Pallas: fall back to default buffering
            out = _launch(False)
    else:
        out = _launch(False)

    return out[:B, :num_classes]


def _reference(x_nchw, weight, bias, temp=TEMP):
    gap = jnp.mean(x_nchw.astype(jnp.float32), axis=(2, 3))   # (B, C)
    y = temp * (jax.nn.sigmoid(gap / temp) - 0.5)
    return y @ weight + bias


if __name__ == "__main__":
    key = jax.random.PRNGKey(0)
    kx, kw, kb, kx2, kw2, kb2 = jax.random.split(key, 6)

    # Shapes implied by the module: (B, C=in_features, H, W) -> num_classes.
    B, C, H, W = 2, 4, 16, 16
    num_classes = 8

    x = jax.random.normal(kx, (B, C, H, W), dtype=jnp.float32)
    # Deterministic "nn.Linear"-style parameters (synthetic init).
    weight = jax.random.normal(kw, (C, num_classes), dtype=jnp.float32) * 0.1
    bias = jax.random.normal(kb, (num_classes,), dtype=jnp.float32) * 0.1

    ref = _reference(x, weight, bias)

    # 1) Auto tiling (single HW tile).
    out = jax.block_until_ready(gap_clip_block(x, weight, bias))
    assert out.shape == (B, num_classes)
    assert jnp.allclose(out, ref, atol=1e-4, rtol=1e-4), "mismatch vs reference (auto tiles)"

    # 2) Small HW tile: exercises multi-step accumulation / pl.when init-finalize.
    out2 = jax.block_until_ready(gap_clip_block(x, weight, bias, hw_tile=128))
    assert jnp.allclose(out2, ref, atol=1e-4, rtol=1e-4), "mismatch vs reference (hw_tile=128)"

    # 3) Ragged everything: HW=49 (masked last tile), C=5, num_classes=10, B=3.
    B2, C2, H2, W2, NC2 = 3, 5, 7, 7, 10
    x2 = jax.random.normal(kx2, (B2, C2, H2, W2), dtype=jnp.float32)
    w2 = jax.random.normal(kw2, (C2, NC2), dtype=jnp.float32) * 0.1
    b2 = jax.random.normal(kb2, (NC2,), dtype=jnp.float32) * 0.1
    out3 = jax.block_until_ready(gap_clip_block(x2, w2, b2))
    assert out3.shape == (B2, NC2)
    assert jnp.allclose(out3, _reference(x2, w2, b2), atol=1e-4, rtol=1e-4), \
        "mismatch vs reference (ragged shapes)"

    print("KERNEL_OK")
</pallas_src>

<mosaic_0001>
module attributes {stable_mosaic.version = 11 : i64} {
  func.func @_gap_clip_dense_kernel(%arg0: i32, %arg1: i32, %arg2: memref<2x4x256xf32, #tpu.memory_space<vmem>>, %arg3: memref<4x128xf32, #tpu.memory_space<vmem>>, %arg4: memref<1x128xf32, #tpu.memory_space<vmem>>, %arg5: memref<2x128xf32, #tpu.memory_space<vmem>>, %arg6: memref<2x4x128xf32, #tpu.memory_space<vmem>>) attributes {dimension_semantics = [#tpu.dimension_semantics<parallel>, #tpu.dimension_semantics<arbitrary>], iteration_bounds = array<i64: 1, 1>, scalar_prefetch = 0 : i64, scratch_operands = 1 : i64, tpu.core_type = #tpu.core_type<tc>, window_params = [{transform_indices = @transform_0, window_bounds = array<i64: 2, 4, 256>}, {pipeline_mode = #tpu.pipeline_mode<synchronous>, transform_indices = @transform_1, window_bounds = array<i64: 4, 128>}, {pipeline_mode = #tpu.pipeline_mode<synchronous>, transform_indices = @transform_2, window_bounds = array<i64: 1, 128>}, {transform_indices = @transform_3, window_bounds = array<i64: 2, 128>}]} {
    %c0_i32 = arith.constant 0 : i32
    %0 = arith.cmpi eq, %arg1, %c0_i32 : i32
    %1 = arith.extui %0 : i1 to i32
    %c0_i32_0 = arith.constant 0 : i32
    %2 = arith.cmpi ne, %1, %c0_i32_0 : i32
    scf.if %2 {
      %cst = arith.constant 0.000000e+00 : f32
      %12 = vector.broadcast %cst : f32 to vector<2x4x128xf32>
      %c0_13 = arith.constant 0 : index
      %c0_14 = arith.constant 0 : index
      %c0_15 = arith.constant 0 : index
      %13 = vector.load %arg6[%c0_13, %c0_14, %c0_15] : memref<2x4x128xf32, #tpu.memory_space<vmem>>, vector<2x4x128xf32>
      tpu.vector_store %arg6[%c0_13, %c0_14, %c0_15], %12 {strides = array<i32>} : memref<2x4x128xf32, #tpu.memory_space<vmem>>, vector<2x4x128xf32>,
    } else {
    }
    %c0 = arith.constant 0 : index
    %c0_1 = arith.constant 0 : index
    %c0_2 = arith.constant 0 : index
    %3 = vector.load %arg2[%c0, %c0_1, %c0_2] : memref<2x4x256xf32, #tpu.memory_space<vmem>>, vector<2x4x128xf32>
    %c0_3 = arith.constant 0 : index
    %c0_4 = arith.constant 0 : index
    %c128 = arith.constant 128 : index
    %4 = vector.load %arg2[%c0_3, %c0_4, %c128] : memref<2x4x256xf32, #tpu.memory_space<vmem>>, vector<2x4x128xf32>
    %5 = arith.addf %3, %4 : vector<2x4x128xf32>
    %c0_5 = arith.constant 0 : index
    %c0_6 = arith.constant 0 : index
    %c0_7 = arith.constant 0 : index
    %6 = vector.load %arg6[%c0_5, %c0_6, %c0_7] : memref<2x4x128xf32, #tpu.memory_space<vmem>>, vector<2x4x128xf32>
    %7 = arith.addf %6, %5 : vector<2x4x128xf32>
    %c0_8 = arith.constant 0 : index
    %c0_9 = arith.constant 0 : index
    %c0_10 = arith.constant 0 : index
    %8 = vector.load %arg6[%c0_8, %c0_9, %c0_10] : memref<2x4x128xf32, #tpu.memory_space<vmem>>, vector<2x4x128xf32>
    tpu.vector_store %arg6[%c0_8, %c0_9, %c0_10], %7 {strides = array<i32>} : memref<2x4x128xf32, #tpu.memory_space<vmem>>, vector<2x4x128xf32>,
    %c0_i32_11 = arith.constant 0 : i32
    %9 = arith.cmpi eq, %arg1, %c0_i32_11 : i32
    %10 = arith.extui %9 : i1 to i32
    %c0_i32_12 = arith.constant 0 : i32
    %11 = arith.cmpi ne, %10, %c0_i32_12 : i32
    scf.if %11 {
      %c0_13 = arith.constant 0 : index
      %c0_14 = arith.constant 0 : index
      %c0_15 = arith.constant 0 : index
      %12 = vector.load %arg6[%c0_13, %c0_14, %c0_15] : memref<2x4x128xf32, #tpu.memory_space<vmem>>, vector<2x4x128xf32>
      %cst = arith.constant dense<0.000000e+00> : vector<2x4xf32>
      %13 = vector.multi_reduction <add>, %12, %cst [2] : vector<2x4x128xf32> to vector<2x4xf32>
      %cst_16 = arith.constant 0.001953125 : f32
      %14 = vector.broadcast %cst_16 : f32 to vector<2x4xf32>
      %15 = arith.mulf %13, %14 : vector<2x4xf32>
      %16 = arith.negf %15 : vector<2x4xf32>
      %17 = math.exp %16 : vector<2x4xf32>
      %cst_17 = arith.constant 1.000000e+00 : f32
      %18 = vector.broadcast %cst_17 : f32 to vector<2x4xf32>
      %19 = arith.addf %18, %17 : vector<2x4xf32>
      %20 = arith.divf %18, %19 : vector<2x4xf32>
      %cst_18 = arith.constant 5.000000e-01 : f32
      %21 = vector.broadcast %cst_18 : f32 to vector<2x4xf32>
      %22 = arith.subf %20, %21 : vector<2x4xf32>
      %cst_19 = arith.constant 2.000000e+00 : f32
      %23 = vector.broadcast %cst_19 : f32 to vector<2x4xf32>
      %24 = arith.mulf %23, %22 : vector<2x4xf32>
      %c0_20 = arith.constant 0 : index
      %c0_21 = arith.constant 0 : index
      %25 = vector.load %arg3[%c0_20, %c0_21] : memref<4x128xf32, #tpu.memory_space<vmem>>, vector<4x128xf32>
      %cst_22 = arith.constant dense<0.000000e+00> : vector<2x128xf32>
      %26 = tpu.matmul %24, %25, %cst_22 {dimension_numbers = #tpu.dot_dimension_numbers<[1], [0], [0], [1], [0, 0, 1, 1], [], []>} : vector<2x4xf32>, vector<4x128xf32>, vector<2x128xf32> -> vector<2x128xf32>
      %c0_23 = arith.constant 0 : index
      %c0_24 = arith.constant 0 : index
      %27 = vector.load %arg4[%c0_23, %c0_24] : memref<1x128xf32, #tpu.memory_space<vmem>>, vector<1x128xf32>
      %28 = vector.broadcast %27 : vector<1x128xf32> to vector<2x128xf32>
      %29 = arith.addf %26, %28 : vector<2x128xf32>
      %c0_25 = arith.constant 0 : index
      %c0_26 = arith.constant 0 : index
      %30 = vector.load %arg5[%c0_25, %c0_26] : memref<2x128xf32, #tpu.memory_space<vmem>>, vector<2x128xf32>
      tpu.vector_store %arg5[%c0_25, %c0_26], %29 {strides = array<i32>} : memref<2x128xf32, #tpu.memory_space<vmem>>, vector<2x128xf32>,
    } else {
    }
    return
  }
  func.func @transform_0(%arg0: i32, %arg1: i32) -> (i32, i32, i32) {
    %c0_i32 = arith.constant 0 : i32
    %c0_i32_0 = arith.constant 0 : i32
    return %arg0, %c0_i32, %arg1 : i32, i32, i32
  }
  func.func @transform_1(%arg0: i32, %arg1: i32) -> (i32, i32) {
    %c0_i32 = arith.constant 0 : i32
    %c0_i32_0 = arith.constant 0 : i32
    %c0_i32_1 = arith.constant 0 : i32
    return %c0_i32, %c0_i32_0 : i32, i32
  }
  func.func @transform_2(%arg0: i32, %arg1: i32) -> (i32, i32) {
    %c0_i32 = arith.constant 0 : i32
    %c0_i32_0 = arith.constant 0 : i32
    %c0_i32_1 = arith.constant 0 : i32
    return %c0_i32, %c0_i32_0 : i32, i32
  }
  func.func @transform_3(%arg0: i32, %arg1: i32) -> (i32, i32) {
    %c0_i32 = arith.constant 0 : i32
    %c0_i32_0 = arith.constant 0 : i32
    return %arg0, %c0_i32 : i32, i32
  }
}

module attributes {stable_mosaic.version = 11 : i64} {
  func.func @_gap_clip_dense_kernel(%arg0: i32, %arg1: i32, %arg2: memref<2x4x256xf32, #tpu.memory_space<vmem>>, %arg3: memref<4x128xf32, #tpu.memory_space<vmem>>, %arg4: memref<1x128xf32, #tpu.memory_space<vmem>>, %arg5: memref<2x128xf32, #tpu.memory_space<vmem>>, %arg6: memref<2x4x128xf32, #tpu.memory_space<vmem>>) attributes {dimension_semantics = [#tpu.dimension_semantics<parallel>, #tpu.dimension_semantics<arbitrary>], iteration_bounds = array<i64: 1, 1>, scalar_prefetch = 0 : i64, scratch_operands = 1 : i64, tpu.core_type = #tpu.core_type<tc>, window_params = [{transform_indices = @transform_0, window_bounds = array<i64: 2, 4, 256>}, {pipeline_mode = #tpu.pipeline_mode<synchronous>, transform_indices = @transform_1, window_bounds = array<i64: 4, 128>}, {pipeline_mode = #tpu.pipeline_mode<synchronous>, transform_indices = @transform_2, window_bounds = array<i64: 1, 128>}, {transform_indices = @transform_3, window_bounds = array<i64: 2, 128>}]} {
    %c0_i32 = arith.constant 0 : i32
    %0 = arith.cmpi eq, %arg1, %c0_i32 : i32
    %1 = arith.extui %0 : i1 to i32
    %c0_i32_0 = arith.constant 0 : i32
    %2 = arith.cmpi ne, %1, %c0_i32_0 : i32
    scf.if %2 {
      %cst = arith.constant 0.000000e+00 : f32
      %12 = vector.broadcast %cst : f32 to vector<2x4x128xf32>
      %c0_13 = arith.constant 0 : index
      %c0_14 = arith.constant 0 : index
      %c0_15 = arith.constant 0 : index
      %13 = vector.load %arg6[%c0_13, %c0_14, %c0_15] : memref<2x4x128xf32, #tpu.memory_space<vmem>>, vector<2x4x128xf32>
      tpu.vector_store %arg6[%c0_13, %c0_14, %c0_15], %12 {strides = array<i32>} : memref<2x4x128xf32, #tpu.memory_space<vmem>>, vector<2x4x128xf32>,
    } else {
    }
    %c0 = arith.constant 0 : index
    %c0_1 = arith.constant 0 : index
    %c0_2 = arith.constant 0 : index
    %3 = vector.load %arg2[%c0, %c0_1, %c0_2] : memref<2x4x256xf32, #tpu.memory_space<vmem>>, vector<2x4x128xf32>
    %c0_3 = arith.constant 0 : index
    %c0_4 = arith.constant 0 : index
    %c128 = arith.constant 128 : index
    %4 = vector.load %arg2[%c0_3, %c0_4, %c128] : memref<2x4x256xf32, #tpu.memory_space<vmem>>, vector<2x4x128xf32>
    %5 = arith.addf %3, %4 : vector<2x4x128xf32>
    %c0_5 = arith.constant 0 : index
    %c0_6 = arith.constant 0 : index
    %c0_7 = arith.constant 0 : index
    %6 = vector.load %arg6[%c0_5, %c0_6, %c0_7] : memref<2x4x128xf32, #tpu.memory_space<vmem>>, vector<2x4x128xf32>
    %7 = arith.addf %6, %5 : vector<2x4x128xf32>
    %c0_8 = arith.constant 0 : index
    %c0_9 = arith.constant 0 : index
    %c0_10 = arith.constant 0 : index
    %8 = vector.load %arg6[%c0_8, %c0_9, %c0_10] : memref<2x4x128xf32, #tpu.memory_space<vmem>>, vector<2x4x128xf32>
    tpu.vector_store %arg6[%c0_8, %c0_9, %c0_10], %7 {strides = array<i32>} : memref<2x4x128xf32, #tpu.memory_space<vmem>>, vector<2x4x128xf32>,
    %c0_i32_11 = arith.constant 0 : i32
    %9 = arith.cmpi eq, %arg1, %c0_i32_11 : i32
    %10 = arith.extui %9 : i1 to i32
    %c0_i32_12 = arith.constant 0 : i32
    %11 = arith.cmpi ne, %10, %c0_i32_12 : i32
    scf.if %11 {
      %c0_13 = arith.constant 0 : index
      %c0_14 = arith.constant 0 : index
      %c0_15 = arith.constant 0 : index
      %12 = vector.load %arg6[%c0_13, %c0_14, %c0_15] : memref<2x4x128xf32, #tpu.memory_space<vmem>>, vector<2x4x128xf32>
      %cst = arith.constant dense<0.000000e+00> : vector<2x4xf32>
      %13 = vector.multi_reduction <add>, %12, %cst [2] : vector<2x4x128xf32> to vector<2x4xf32>
      %cst_16 = arith.constant 0.001953125 : f32
      %14 = vector.broadcast %cst_16 : f32 to vector<2x4xf32>
      %15 = arith.mulf %13, %14 : vector<2x4xf32>
      %16 = arith.negf %15 : vector<2x4xf32>
      %17 = math.exp %16 : vector<2x4xf32>
      %cst_17 = arith.constant 1.000000e+00 : f32
      %18 = vector.broadcast %cst_17 : f32 to vector<2x4xf32>
      %19 = arith.addf %18, %17 : vector<2x4xf32>
      %20 = arith.divf %18, %19 : vector<2x4xf32>
      %cst_18 = arith.constant 5.000000e-01 : f32
      %21 = vector.broadcast %cst_18 : f32 to vector<2x4xf32>
      %22 = arith.subf %20, %21 : vector<2x4xf32>
      %cst_19 = arith.constant 2.000000e+00 : f32
      %23 = vector.broadcast %cst_19 : f32 to vector<2x4xf32>
      %24 = arith.mulf %23, %22 : vector<2x4xf32>
      %c0_20 = arith.constant 0 : index
      %c0_21 = arith.constant 0 : index
      %25 = vector.load %arg3[%c0_20, %c0_21] : memref<4x128xf32, #tpu.memory_space<vmem>>, vector<4x128xf32>
      %cst_22 = arith.constant dense<0.000000e+00> : vector<2x128xf32>
      %26 = tpu.matmul %24, %25, %cst_22 {dimension_numbers = #tpu.dot_dimension_numbers<[1], [0], [0], [1], [0, 0, 1, 1], [], []>} : vector<2x4xf32>, vector<4x128xf32>, vector<2x128xf32> -> vector<2x128xf32>
      %c0_23 = arith.constant 0 : index
      %c0_24 = arith.constant 0 : index
      %27 = vector.load %arg4[%c0_23, %c0_24] : memref<1x128xf32, #tpu.memory_space<vmem>>, vector<1x128xf32>
      %28 = vector.broadcast %27 : vector<1x128xf32> to vector<2x128xf32>
      %29 = arith.addf %26, %28 : vector<2x128xf32>
      %c0_25 = arith.constant 0 : index
      %c0_26 = arith.constant 0 : index
      %30 = vector.load %arg5[%c0_25, %c0_26] : memref<2x128xf32, #tpu.memory_space<vmem>>, vector<2x128xf32>
      tpu.vector_store %arg5[%c0_25, %c0_26], %29 {strides = array<i32>} : memref<2x128xf32, #tpu.memory_space<vmem>>, vector<2x128xf32>,
    } else {
    }
    return
  }
  func.func @transform_0(%arg0: i32, %arg1: i32) -> (i32, i32, i32) {
    %c0_i32 = arith.constant 0 : i32
    %c0_i32_0 = arith.constant 0 : i32
    return %arg0, %c0_i32, %arg1 : i32, i32, i32
  }
  func.func @transform_1(%arg0: i32, %arg1: i32) -> (i32, i32) {
    %c0_i32 = arith.constant 0 : i32
    %c0_i32_0 = arith.constant 0 : i32
    %c0_i32_1 = arith.constant 0 : i32
    return %c0_i32, %c0_i32_0 : i32, i32
  }
  func.func @transform_2(%arg0: i32, %arg1: i32) -> (i32, i32) {
    %c0_i32 = arith.constant 0 : i32
    %c0_i32_0 = arith.constant 0 : i32
    %c0_i32_1 = arith.constant 0 : i32
    return %c0_i32, %c0_i32_0 : i32, i32
  }
  func.func @transform_3(%arg0: i32, %arg1: i32) -> (i32, i32) {
    %c0_i32 = arith.constant 0 : i32
    %c0_i32_0 = arith.constant 0 : i32
    return %arg0, %c0_i32 : i32, i32
  }
}

</mosaic_0001>

<bundles_post_ra>
// kernel: tpu_custom_call.1
= control target key start
LH: loop header
LB: loop body
LE: loop exit
PB: predicated region body
PF: predicated region fallthrough
CT: control target
= control target key end

     0   :  { %8 = vsyncpa [#allocation4], 0  ;;  %s371_s0 = inlined_call_operand.hbm [shape: f32[2,4,256], index: 0, kind: input, shape index: {}]   ;;  %s372_s1 = inlined_call_operand.hbm [shape: f32[4,128], index: 1, kind: input, shape index: {}]   ;;  %s373_s2 = inlined_call_operand.vmem [shape: f32[1,128], index: 2, kind: input, shape index: {}]   ;;  %s374_s3 = inlined_call_operand.hbm [shape: f32[2,128], index: 3, kind: output, shape index: {}]  }
   0x1   :  { %9 = vsyncpa [#allocation7], 0 }
   0x2   :  { %10 = vsyncpa [#allocation5], 0  ;;  %s305_s12 = smov [#allocation3]   ;;  %s233_s16 = scalar_lea.hbm %s371_s0, 256 }
   0x3   :  { %s16_s13 = sshll.u32 %s305_s12, 4  ;;  %p234_p0 = scmp.ne.s32.totalorder %s371_s0, %s233_s16  ;;  %s17_s13 = int_to_ptr.vmem [resolvable:$true] %s16_s13 }
   0x4   :  { %p237_p1 = scmp.lt.u32.totalorder %s233_s16, %s371_s0 }
   0x6   :  { %p239_p2 = pnand %p237_p1, %p234_p0 }
   0x8   :  { %242 = shalt.err (!%p239_p2)
}
   0x9   :  { %s243_s21 = scalar_lea.vmem %s17_s13, 256  ;;  %p248_p4 = scmp.lt.s32.totalorder %s17_s13, %s17_s13 }
   0xa   :  { %p244_p3 = scmp.ne.s32.totalorder %s17_s13, %s243_s21  ;;  %p249_p5 = scmp.lt.s32.totalorder %s243_s21, %s243_s21 }
   0xc   :  { %p250_p6 = por %p249_p5, %p248_p4 }
   0xe   :  { %p251_p7 = pnand %p250_p6, %p244_p3 }
  0x10   :  { %254 = shalt.err (!%p251_p7)
}
  0x11   :  { %s306_s22 = smov 128   ;;  %s307_s23 = smov 8  }
  0x12   :  { %22 = dma.hbm_to_vmem [thread:$0]  %s371_s0, 256, %s17_s13, [#allocation4], %s306_s22, %s306_s22, %s307_s23  }
  0x13   :  { %s308_s26 = smov [#allocation6]   ;;  %s255_s30 = scalar_lea.hbm %s372_s1, 64 }
  0x14   :  { %s29_s27 = sshll.u32 %s308_s26, 4  ;;  %p256_p8 = scmp.ne.s32.totalorder %s372_s1, %s255_s30  ;;  %s30_s27 = int_to_ptr.vmem [resolvable:$true] %s29_s27 }
  0x15   :  { %p259_p9 = scmp.lt.u32.totalorder %s255_s30, %s372_s1 }
  0x17   :  { %p261_p10 = pnand %p259_p9, %p256_p8 }
  0x19   :  { %264 = shalt.err (!%p261_p10)
}
  0x1a   :  { %s265_s8 = scalar_lea.vmem %s30_s27, 64  ;;  %p270_p12 = scmp.lt.s32.totalorder %s30_s27, %s30_s27 }
  0x1b   :  { %p266_p11 = scmp.ne.s32.totalorder %s30_s27, %s265_s8  ;;  %p271_p13 = scmp.lt.s32.totalorder %s265_s8, %s265_s8 }
  0x1d   :  { %p272_p0 = por %p271_p13, %p270_p12 }
  0x1f   :  { %p273_p1 = pnand %p272_p0, %p266_p11 }
  0x21   :  { %276 = shalt.err (!%p273_p1)
}
  0x22   :  { %32 = dma.hbm_to_vmem [thread:$0]  %s372_s1, 64, %s30_s27, [#allocation7]  }
  0x23   :  { %299 = dma.done.wait [#allocation4], 256  }
  0x24   :  { %300 = vsyncadd [#allocation4], 4294967040 }
  0x25   :  { %301 = dma.done.wait [#allocation7], 64  }
  0x26   :  { %302 = vsyncadd [#allocation7], 4294967232  ;;  %v309_v0 = vmov 0.0   ;;  %v47_v1 = vld [vmem:[#allocation3] sm:$0xf]  ;;  %vm64_vm0 = vcmask 1043456   ;;  %v99_v26 = vlaneseq }
  0x27   :  { %45 = vst [vmem:[#allocation2] sm:$0xf] %v309_v0  ;;  %46 = vst [vmem:[#allocation2 + $0x4] sm:$0xf] %v309_v0  ;;  %213 = vmatprep.subr.mxu0 %v309_v0  ;;  %v49_v2 = vld [vmem:[#allocation3 + $0x4] sm:$0xf] }
  0x28   :  { %v48_v3 = vld [vmem:[#allocation3 + $0x8] sm:$0xf]  ;;  %v51_v4 = vadd.f32 %v49_v2, %v47_v1  ;;  %v50_v6 = vld [vmem:[#allocation3 + $0xc] sm:$0xf]  ;;  %v89_v15 = vld [vmem:[#allocation6] sm:$0xf] }
  0x29   :  { %v52_v8 = vadd.f32 %v50_v6, %v48_v3  ;;  %214 = vmatpush3.msk.msra.mxu0 %vm64_vm0, %v89_v15  ;;  %vm310_vm1 = vmmov 0   ;;  %v100_v29 = vand.u32 127, %v99_v26  ;;  %v102_v30 = vshrl.u32 %v99_v26, 7  ;;  %v208_v39 = vld [vmem:[%s373_s2] ss:$0 sm:$0xff]  ;;  %s311_s11 = smov [#allocation8]  }
  0x2a   :  { %215 = vmatprep.mubr.msk.f32.mxu0 %vm310_vm1, %v309_v0  ;;  %vm109_vm2 = vcmask 1041409   ;;  %vm111_vm3 = vcmask 31744   ;;  %s194_s12 = sshll.u32 %s311_s11, 4  ;;  %s195_s12 = int_to_ptr.vmem [resolvable:$true] %s194_s12 }
  0x2b   :  { %v103_v34 = vsub.s32 %v100_v29, %v102_v30  ;;  %s277_s13 = scalar_lea.vmem %s195_s12, 32  ;;  %p282_p3 = scmp.lt.s32.totalorder %s195_s12, %s195_s12 }
  0x2c   :  { %p278_p2 = scmp.ne.s32.totalorder %s195_s12, %s277_s13  ;;  %p283_p4 = scmp.lt.s32.totalorder %s277_s13, %s277_s13 }
  0x2e   :  { %v53_v5 = vld [vmem:[#allocation2] sm:$0xf]  ;;  %v54_v7 = vld [vmem:[#allocation2 + $0x4] sm:$0xf]  ;;  %p284_p5 = por %p283_p4, %p282_p3 }
  0x2f   :  { %v55_v9 = vadd.f32 %v53_v5, %v51_v4  ;;  %v56_v10 = vadd.f32 %v54_v7, %v52_v8 }
  0x30   :  { %p285_p6 = pnand %p284_p5, %p278_p2 }
  0x31   :  { %57 = vst [vmem:[#allocation2] sm:$0xf] %v55_v9  ;;  %58 = vst [vmem:[#allocation2 + $0x4] sm:$0xf] %v56_v10 }
  0x38   :  { %v62_v11 = vld [vmem:[#allocation2] sm:$0xf]  ;;  %v63_v13 = vld [vmem:[#allocation2 + $0x4] sm:$0xf] }
  0x39   :  { %v65_v12 = vsel %vm64_vm0, %v62_v11, 0.0  ;;  %v68_v14 = vsel %vm64_vm0, %v63_v13, 0.0 }
  0x3a   :  { %66 = vadd.xlane.f32.xlu0 %v65_v12 }
  0x3e   :  { %69 = vadd.xlane.f32.xlu0 %v68_v14 }
  0xc7   :  { %v67_v16 = vpop.xlane.xlu0 %66 }
  0xc8   :  { %v204_v17 = vmul.f32 -0.001953125, %v67_v16 }
  0xca   :  { %v75_v18 = vmul.f32 1.442695, %v204_v17 }
  0xcb   :  { %v70_v19 = vpop.xlane.xlu0 %69 }
  0xcc   :  { %225 = vpow2.f32 %v75_v18  ;;  %v205_v20 = vmul.f32 -0.001953125, %v70_v19 }
  0xce   :  { %v77_v21 = vmul.f32 1.442695, %v205_v20 }
  0xd0   :  { %227 = vpow2.f32 %v77_v21 }
  0xd6   :  { %v226_v22 = vpop.eup %225 }
  0xd7   :  { %v79_v23 = vadd.f32 1.0, %v226_v22 }
  0xd9   :  { %229 = vrcp.f32 %v79_v23 }
  0xda   :  { %v228_v24 = vpop.eup %227 }
  0xdb   :  { %v80_v25 = vadd.f32 1.0, %v228_v24 }
  0xdd   :  { %231 = vrcp.f32 %v80_v25 }
  0xe3   :  { %v230_v27 = vpop.eup %229 }
  0xe4   :  { %v206_v28 = vadd.f32 -0.5, %v230_v27 }
  0xe6   :  { %v87_v32 = vmul.f32 2.0, %v206_v28 }
  0xe7   :  { %v232_v31 = vpop.eup %231 }
  0xe8   :  { %v207_v33 = vadd.f32 -0.5, %v232_v31  ;;  %v104_v36 = vrot.slane %v87_v32, %v103_v34 }
  0xea   :  { %v88_v35 = vmul.f32 2.0, %v207_v33 }
  0xec   :  { %v108_v37 = vrot.slane %v88_v35, %v103_v34 }
  0xee   :  { %v110_v38 = vsel %vm109_vm2, %v108_v37, %v104_v36 }
  0xef   :  { %216 = vmatmul.mubr.msk.f32.vlgmr.msra.gmra.mrb[0].mxu0 %vm111_vm3, %v110_v38 }
 0x1c2   :  { %v183_v40 = vpop.f32.mrb[0].mxu0 }
 0x1c3   :  { %v184_v41 = vadd.f32 %v208_v39, %v183_v40  ;;  %v217_v42 = vpop.f32.mrb[1].mxu0 }
 0x1c5   :  { %187 = vst [vmem:[#allocation8] sm:$0x3] %v184_v41 }
 0x1c6   :  { %288 = shalt.err (!%p285_p6)
}
 0x1c7   :  { %s289_s16 = scalar_lea.hbm %s374_s3, 32 }
 0x1c8   :  { %p290_p7 = scmp.ne.s32.totalorder %s374_s3, %s289_s16  ;;  %p293_p8 = scmp.lt.u32.totalorder %s289_s16, %s374_s3 }
 0x1ca   :  { %p295_p9 = pnand %p293_p8, %p290_p7 }
 0x1cc   :  { %298 = shalt.err (!%p295_p9)
}
 0x1cd   :  { %197 = dma.vmem_to_hbm [thread:$0]  %s195_s12, 32, %s374_s3, [#allocation5]  }
 0x1ce   :  { %303 = dma.done.wait [#allocation5], 32  }
 0x1cf   :  { %304 = vsyncadd [#allocation5], 4294967264 }
 0x1d0   :  { %201 = vsyncpa [#allocation4], 1 }
 0x1d1   :  { %202 = vsyncpa [#allocation7], 1 }
 0x1d2   :  { %203 = vsyncpa [#allocation5], 1 }

// kernel: tpu_custom_call.1
= control target key start
LH: loop header
LB: loop body
LE: loop exit
PB: predicated region body
PF: predicated region fallthrough
CT: control target
= control target key end

     0   :  { %8 = vsyncpa [#allocation4], 0  ;;  %s371_s0 = inlined_call_operand.hbm [shape: f32[2,4,256], index: 0, kind: input, shape index: {}]   ;;  %s372_s1 = inlined_call_operand.hbm [shape: f32[4,128], index: 1, kind: input, shape index: {}]   ;;  %s373_s2 = inlined_call_operand.vmem [shape: f32[1,128], index: 2, kind: input, shape index: {}]   ;;  %s374_s3 = inlined_call_operand.hbm [shape: f32[2,128], index: 3, kind: output, shape index: {}]  }
   0x1   :  { %9 = vsyncpa [#allocation7], 0 }
   0x2   :  { %10 = vsyncpa [#allocation5], 0  ;;  %s305_s12 = smov [#allocation3]   ;;  %s233_s16 = scalar_lea.hbm %s371_s0, 256 }
   0x3   :  { %s16_s13 = sshll.u32 %s305_s12, 4  ;;  %p234_p0 = scmp.ne.s32.totalorder %s371_s0, %s233_s16  ;;  %s17_s13 = int_to_ptr.vmem [resolvable:$true] %s16_s13 }
   0x4   :  { %p237_p1 = scmp.lt.u32.totalorder %s233_s16, %s371_s0 }
   0x6   :  { %p239_p2 = pnand %p237_p1, %p234_p0 }
   0x8   :  { %242 = shalt.err (!%p239_p2)
}
   0x9   :  { %s243_s21 = scalar_lea.vmem %s17_s13, 256  ;;  %p248_p4 = scmp.lt.s32.totalorder %s17_s13, %s17_s13 }
   0xa   :  { %p244_p3 = scmp.ne.s32.totalorder %s17_s13, %s243_s21  ;;  %p249_p5 = scmp.lt.s32.totalorder %s243_s21, %s243_s21 }
   0xc   :  { %p250_p6 = por %p249_p5, %p248_p4 }
   0xe   :  { %p251_p7 = pnand %p250_p6, %p244_p3 }
  0x10   :  { %254 = shalt.err (!%p251_p7)
}
  0x11   :  { %s306_s22 = smov 128   ;;  %s307_s23 = smov 8  }
  0x12   :  { %22 = dma.hbm_to_vmem [thread:$0]  %s371_s0, 256, %s17_s13, [#allocation4], %s306_s22, %s306_s22, %s307_s23  }
  0x13   :  { %s308_s26 = smov [#allocation6]   ;;  %s255_s30 = scalar_lea.hbm %s372_s1, 64 }
  0x14   :  { %s29_s27 = sshll.u32 %s308_s26, 4  ;;  %p256_p8 = scmp.ne.s32.totalorder %s372_s1, %s255_s30  ;;  %s30_s27 = int_to_ptr.vmem [resolvable:$true] %s29_s27 }
  0x15   :  { %p259_p9 = scmp.lt.u32.totalorder %s255_s30, %s372_s1 }
  0x17   :  { %p261_p10 = pnand %p259_p9, %p256_p8 }
  0x19   :  { %264 = shalt.err (!%p261_p10)
}
  0x1a   :  { %s265_s8 = scalar_lea.vmem %s30_s27, 64  ;;  %p270_p12 = scmp.lt.s32.totalorder %s30_s27, %s30_s27 }
  0x1b   :  { %p266_p11 = scmp.ne.s32.totalorder %s30_s27, %s265_s8  ;;  %p271_p13 = scmp.lt.s32.totalorder %s265_s8, %s265_s8 }
  0x1d   :  { %p272_p0 = por %p271_p13, %p270_p12 }
  0x1f   :  { %p273_p1 = pnand %p272_p0, %p266_p11 }
  0x21   :  { %276 = shalt.err (!%p273_p1)
}
  0x22   :  { %32 = dma.hbm_to_vmem [thread:$0]  %s372_s1, 64, %s30_s27, [#allocation7]  }
  0x23   :  { %299 = dma.done.wait [#allocation4], 256  }
  0x24   :  { %300 = vsyncadd [#allocation4], 4294967040 }
  0x25   :  { %301 = dma.done.wait [#allocation7], 64  }
  0x26   :  { %302 = vsyncadd [#allocation7], 4294967232  ;;  %v309_v0 = vmov 0.0   ;;  %v47_v1 = vld [vmem:[#allocation3] sm:$0xf]  ;;  %vm64_vm0 = vcmask 1043456   ;;  %v99_v26 = vlaneseq }
  0x27   :  { %45 = vst [vmem:[#allocation2] sm:$0xf] %v309_v0  ;;  %46 = vst [vmem:[#allocation2 + $0x4] sm:$0xf] %v309_v0  ;;  %213 = vmatprep.subr.mxu0 %v309_v0  ;;  %v49_v2 = vld [vmem:[#allocation3 + $0x4] sm:$0xf] }
  0x28   :  { %v48_v3 = vld [vmem:[#allocation3 + $0x8] sm:$0xf]  ;;  %v51_v4 = vadd.f32 %v49_v2, %v47_v1  ;;  %v50_v6 = vld [vmem:[#allocation3 + $0xc] sm:$0xf]  ;;  %v89_v15 = vld [vmem:[#allocation6] sm:$0xf] }
  0x29   :  { %v52_v8 = vadd.f32 %v50_v6, %v48_v3  ;;  %214 = vmatpush3.msk.msra.mxu0 %vm64_vm0, %v89_v15  ;;  %vm310_vm1 = vmmov 0   ;;  %v100_v29 = vand.u32 127, %v99_v26  ;;  %v102_v30 = vshrl.u32 %v99_v26, 7  ;;  %v208_v39 = vld [vmem:[%s373_s2] ss:$0 sm:$0xff]  ;;  %s311_s11 = smov [#allocation8]  }
  0x2a   :  { %215 = vmatprep.mubr.msk.f32.mxu0 %vm310_vm1, %v309_v0  ;;  %vm109_vm2 = vcmask 1041409   ;;  %vm111_vm3 = vcmask 31744   ;;  %s194_s12 = sshll.u32 %s311_s11, 4  ;;  %s195_s12 = int_to_ptr.vmem [resolvable:$true] %s194_s12 }
  0x2b   :  { %v103_v34 = vsub.s32 %v100_v29, %v102_v30  ;;  %s277_s13 = scalar_lea.vmem %s195_s12, 32  ;;  %p282_p3 = scmp.lt.s32.totalorder %s195_s12, %s195_s12 }
  0x2c   :  { %p278_p2 = scmp.ne.s32.totalorder %s195_s12, %s277_s13  ;;  %p283_p4 = scmp.lt.s32.totalorder %s277_s13, %s277_s13 }
  0x2e   :  { %v53_v5 = vld [vmem:[#allocation2] sm:$0xf]  ;;  %v54_v7 = vld [vmem:[#allocation2 + $0x4] sm:$0xf]  ;;  %p284_p5 = por %p283_p4, %p282_p3 }
  0x2f   :  { %v55_v9 = vadd.f32 %v53_v5, %v51_v4  ;;  %v56_v10 = vadd.f32 %v54_v7, %v52_v8 }
  0x30   :  { %p285_p6 = pnand %p284_p5, %p278_p2 }
  0x31   :  { %57 = vst [vmem:[#allocation2] sm:$0xf] %v55_v9  ;;  %58 = vst [vmem:[#allocation2 + $0x4] sm:$0xf] %v56_v10 }
  0x38   :  { %v62_v11 = vld [vmem:[#allocation2] sm:$0xf]  ;;  %v63_v13 = vld [vmem:[#allocation2 + $0x4] sm:$0xf] }
  0x39   :  { %v65_v12 = vsel %vm64_vm0, %v62_v11, 0.0  ;;  %v68_v14 = vsel %vm64_vm0, %v63_v13, 0.0 }
  0x3a   :  { %66 = vadd.xlane.f32.xlu0 %v65_v12 }
  0x3e   :  { %69 = vadd.xlane.f32.xlu0 %v68_v14 }
  0xc7   :  { %v67_v16 = vpop.xlane.xlu0 %66 }
  0xc8   :  { %v204_v17 = vmul.f32 -0.001953125, %v67_v16 }
  0xca   :  { %v75_v18 = vmul.f32 1.442695, %v204_v17 }
  0xcb   :  { %v70_v19 = vpop.xlane.xlu0 %69 }
  0xcc   :  { %225 = vpow2.f32 %v75_v18  ;;  %v205_v20 = vmul.f32 -0.001953125, %v70_v19 }
  0xce   :  { %v77_v21 = vmul.f32 1.442695, %v205_v20 }
  0xd0   :  { %227 = vpow2.f32 %v77_v21 }
  0xd6   :  { %v226_v22 = vpop.eup %225 }
  0xd7   :  { %v79_v23 = vadd.f32 1.0, %v226_v22 }
  0xd9   :  { %229 = vrcp.f32 %v79_v23 }
  0xda   :  { %v228_v24 = vpop.eup %227 }
  0xdb   :  { %v80_v25 = vadd.f32 1.0, %v228_v24 }
  0xdd   :  { %231 = vrcp.f32 %v80_v25 }
  0xe3   :  { %v230_v27 = vpop.eup %229 }
  0xe4   :  { %v206_v28 = vadd.f32 -0.5, %v230_v27 }
  0xe6   :  { %v87_v32 = vmul.f32 2.0, %v206_v28 }
  0xe7   :  { %v232_v31 = vpop.eup %231 }
  0xe8   :  { %v207_v33 = vadd.f32 -0.5, %v232_v31  ;;  %v104_v36 = vrot.slane %v87_v32, %v103_v34 }
  0xea   :  { %v88_v35 = vmul.f32 2.0, %v207_v33 }
  0xec   :  { %v108_v37 = vrot.slane %v88_v35, %v103_v34 }
  0xee   :  { %v110_v38 = vsel %vm109_vm2, %v108_v37, %v104_v36 }
  0xef   :  { %216 = vmatmul.mubr.msk.f32.vlgmr.msra.gmra.mrb[0].mxu0 %vm111_vm3, %v110_v38 }
 0x1c2   :  { %v183_v40 = vpop.f32.mrb[0].mxu0 }
 0x1c3   :  { %v184_v41 = vadd.f32 %v208_v39, %v183_v40  ;;  %v217_v42 = vpop.f32.mrb[1].mxu0 }
 0x1c5   :  { %187 = vst [vmem:[#allocation8] sm:$0x3] %v184_v41 }
 0x1c6   :  { %288 = shalt.err (!%p285_p6)
}
 0x1c7   :  { %s289_s16 = scalar_lea.hbm %s374_s3, 32 }
 0x1c8   :  { %p290_p7 = scmp.ne.s32.totalorder %s374_s3, %s289_s16  ;;  %p293_p8 = scmp.lt.u32.totalorder %s289_s16, %s374_s3 }
 0x1ca   :  { %p295_p9 = pnand %p293_p8, %p290_p7 }
 0x1cc   :  { %298 = shalt.err (!%p295_p9)
}
 0x1cd   :  { %197 = dma.vmem_to_hbm [thread:$0]  %s195_s12, 32, %s374_s3, [#allocation5]  }
 0x1ce   :  { %303 = dma.done.wait [#allocation5], 32  }
 0x1cf   :  { %304 = vsyncadd [#allocation5], 4294967264 }
 0x1d0   :  { %201 = vsyncpa [#allocation4], 1 }
 0x1d1   :  { %202 = vsyncpa [#allocation7], 1 }
 0x1d2   :  { %203 = vsyncpa [#allocation5], 1 }

</bundles_post_ra>
